<compile_context>
chip_gen: v5e
topology: v5e:2x2
jax: 0.10.0
libtpu: 0.0.40
codegen_flags: <defaults>
</compile_context>

<pallas_src>
import functools

import jax
import jax.numpy as jnp
from jax.experimental import pallas as pl
from jax.experimental.pallas import tpu as pltpu

BN_EPS = 1e-5
LANE = 128
SUBLANE = 8
MAX_HW_TILE_LANES = 8192      # cap on the phase-1 lane (HW) tile, multiple of 128


def _round_up(a, b):
    return (a + b - 1) // b * b


def _cdiv(a, b):
    return (a + b - 1) // b


def _vmem_budgets():
    """Per-generation (per-buffer tile bytes, vmem_limit_bytes)."""
    try:
        cap = int(pltpu.get_tpu_info().vmem_capacity_bytes)
    except Exception:
        cap = 64 * 1024 * 1024                      # unknown -> assume v7x-sized VMEM
    if cap >= 96 * 1024 * 1024:                     # v5e / v6e: 128 MiB VMEM
        return 12 * 1024 * 1024, 64 * 1024 * 1024
    return 6 * 1024 * 1024, 40 * 1024 * 1024        # v7x: 64 MiB VMEM


def _tree_sum(vals):
    while len(vals) > 1:
        nxt = []
        for i in range(0, len(vals) - 1, 2):
            nxt.append(vals[i] + vals[i + 1])
        if len(vals) % 2:
            nxt.append(vals[-1])
        vals = nxt
    return vals[0]


# --------------------------------------------------------------------------
# Phase 1: streamed spatial sum + tiny 1x1-conv matmul, one partial per Cin tile
# --------------------------------------------------------------------------
def _pool_conv_kernel(x_ref, wt_ref, y_ref, acc_ref, *, hw, thw, cin, tcin, nparts):
    ci = pl.program_id(0)
    hi = pl.program_id(1)
    n_hi = pl.num_programs(1)

    @pl.when(hi == 0)
    def _():
        acc_ref[...] = jnp.zeros_like(acc_ref)

    blk = acc_ref.shape                       # (N, TCIN, LANE)
    folds = thw // LANE
    mask_hw = (hw % thw) != 0                 # static: ragged last HW tile exists

    if mask_hw:
        lane = jax.lax.broadcasted_iota(jnp.int32, blk, 2)
        limit = hw - hi * thw                 # scalar: valid lanes in this tile

    # Element-wise (VPU) accumulation of 128-lane folds via ref-sliced loads;
    # the single cross-lane (XLU) reduce happens only once, at the last tile.
    parts = [jnp.zeros(blk, jnp.float32) for _ in range(max(1, min(nparts, folds)))]
    for k in range(folds):
        xk = x_ref[:, :, k * LANE:(k + 1) * LANE].astype(jnp.float32)
        if mask_hw:
            xk = jnp.where(lane < (limit - k * LANE), xk, 0.0)
        parts[k % len(parts)] = parts[k % len(parts)] + xk
    acc_ref[...] += _tree_sum(parts)

    @pl.when(hi == n_hi - 1)
    def _():
        pooled = jnp.sum(acc_ref[...], axis=-1)            # (N, TCIN): one XLU reduce
        if cin % tcin != 0:                                 # ragged last Cin tile:
            row = jax.lax.broadcasted_iota(jnp.int32, pooled.shape, 1)
            pooled = jnp.where(ci * tcin + row < cin, pooled, 0.0)
        # 1x1 conv == matmul with the pre-transposed weight tile (TCIN, COUT).
        y_ref[...] = jnp.dot(pooled, wt_ref[...],
                             preferred_element_type=jnp.float32)


# --------------------------------------------------------------------------
# Phase 2: bilinear upsample from 1x1 (align_corners=True) == broadcast
# --------------------------------------------------------------------------
def _broadcast_kernel(y_ref, o_ref):
    o_ref[...] = jnp.broadcast_to(y_ref[...][:, :, None], o_ref.shape)


def aspp_pooling(x, weight, gamma, beta, running_mean, running_var):
    """x: (N, Cin, H, W).  Returns (N, Cout, H, W) with x's dtype."""
    n, cin, h, w = x.shape
    cout = weight.shape[0]
    hw = h * w
    out_dtype = x.dtype
    f32 = jnp.float32
    itemsize = jnp.dtype(x.dtype).itemsize

    tile_bytes, vmem_limit = _vmem_budgets()

    # ---- phase-1 tiling: (N, Cin, HW), HW is the contiguous axis -----------
    min_rows = min(cin, SUBLANE)
    lane_cap = max(LANE,
                   (tile_bytes // max(n * min_rows * itemsize, 1)) // LANE * LANE)
    thw = min(MAX_HW_TILE_LANES, _round_up(hw, LANE), lane_cap)
    n_hw_tiles = _cdiv(hw, thw)

    row_bytes = n * thw * itemsize
    tcin_cap = max(SUBLANE, (tile_bytes // max(row_bytes, 1)) // SUBLANE * SUBLANE)
    tcin = cin if cin <= tcin_cap else tcin_cap
    n_cin_tiles = _cdiv(cin, tcin)
    cin_ceil = n_cin_tiles * tcin

    # vreg-pressure-aware number of independent partial sums (fills 4 VALU slots
    # when they fit; falls back to a single running sum for big tiles).
    part_vregs = max(1, _cdiv(n * tcin, SUBLANE))
    nparts = max(1, min(4, 48 // part_vregs))

    # ---- fold BN (running stats) + the 1/(H*W) mean divisor (host-side) ----
    inv_std = jax.lax.rsqrt(running_var.astype(f32) + BN_EPS)
    scale = gamma.astype(f32) * inv_std / float(hw)          # includes 1/(H*W)
    bias = beta.astype(f32) - running_mean.astype(f32) * gamma.astype(f32) * inv_std

    # Pre-transposed 1x1 conv weight: (Cin, Cout); only the tiny weight is padded.
    wt = jnp.transpose(weight.reshape(cout, cin).astype(f32))
    wt = jnp.pad(wt, ((0, cin_ceil - cin), (0, 0)))

    x_flat = x.reshape(n, cin, hw)            # pure reshape: no copy, no pad

    # ---- phase 1: per-Cin-tile spatial sum -> matmul -> (n_ci, N, Cout) ----
    y_parts = pl.pallas_call(
        functools.partial(_pool_conv_kernel, hw=hw, thw=thw,
                          cin=cin, tcin=tcin, nparts=nparts),
        out_shape=jax.ShapeDtypeStruct((n_cin_tiles, n, cout), f32),
        grid_spec=pltpu.PrefetchScalarGridSpec(
            num_scalar_prefetch=0,
            grid=(n_cin_tiles, n_hw_tiles),
            in_specs=[
                pl.BlockSpec((n, tcin, thw), lambda ci, hi: (0, ci, hi)),
                pl.BlockSpec((tcin, cout), lambda ci, hi: (ci, 0)),
            ],
            out_specs=pl.BlockSpec((None, n, cout), lambda ci, hi: (ci, 0, 0)),
            scratch_shapes=[pltpu.VMEM((n, tcin, LANE), jnp.float32)],
        ),
        compiler_params=pltpu.CompilerParams(
            dimension_semantics=("parallel", "arbitrary"),   # megacore over cin tiles
            vmem_limit_bytes=vmem_limit,
        ),
    )(x_flat, wt)

    # ---- tiny cross-tile combine + BN + ReLU (negligible plain-XLA op) -----
    y_small = jnp.sum(y_parts, axis=0) * scale[None, :] + bias[None, :]
    y_small = jnp.maximum(y_small, 0.0).astype(out_dtype)     # (N, Cout)

    # ---- phase 2: lane-dense broadcast over HW -----------------------------
    # TODO(synk): when the ASPP caller immediately concatenates/consumes this
    # branch, skip phase 2 and return y_small so XLA fuses the broadcast.
    out_itemsize = jnp.dtype(out_dtype).itemsize
    out_row_bytes = max(n * cout * out_itemsize, 1)
    thw2 = min(_round_up(hw, LANE),
               max(LANE, (tile_bytes // out_row_bytes) // LANE * LANE))
    n_hw2_tiles = _cdiv(hw, thw2)

    out_flat = pl.pallas_call(
        _broadcast_kernel,
        out_shape=jax.ShapeDtypeStruct((n, cout, hw), out_dtype),
        grid_spec=pltpu.PrefetchScalarGridSpec(
            num_scalar_prefetch=0,
            grid=(n_hw2_tiles,),
            in_specs=[pl.BlockSpec((n, cout), lambda hi: (0, 0))],
            out_specs=pl.BlockSpec((n, cout, thw2), lambda hi: (0, 0, hi)),
        ),
        compiler_params=pltpu.CompilerParams(
            dimension_semantics=("parallel",),
            vmem_limit_bytes=vmem_limit,
        ),
    )(y_small)

    return out_flat.reshape(n, cout, h, w)


def reference(x, weight, gamma, beta, running_mean, running_var):
    pooled = jnp.mean(x, axis=(2, 3))                                # (N, Cin)
    y = pooled @ weight.reshape(weight.shape[0], -1).T               # (N, Cout)
    y = (y - running_mean) * gamma / jnp.sqrt(running_var + BN_EPS) + beta
    y = jnp.maximum(y, 0.0)
    return jnp.broadcast_to(y[:, :, None, None],
                            (x.shape[0], weight.shape[0], x.shape[2], x.shape[3]))


if __name__ == "__main__":
    key = jax.random.PRNGKey(0)
    N, Cin, Cout, H, W = 2, 4, 8, 16, 16

    k0, k1, k2, k3, k4, k5 = jax.random.split(key, 6)
    x = jax.random.normal(k0, (N, Cin, H, W), dtype=jnp.float32)
    # Conv2d(Cin, Cout, 1, bias=False) weight: (Cout, Cin, 1, 1)
    weight = jax.random.normal(k1, (Cout, Cin, 1, 1), dtype=jnp.float32) * 0.1
    # BatchNorm2d(Cout) params (deterministic synthetic values; eval semantics)
    gamma = 1.0 + 0.1 * jax.random.normal(k2, (Cout,), dtype=jnp.float32)
    beta = 0.1 * jax.random.normal(k3, (Cout,), dtype=jnp.float32)
    running_mean = 0.05 * jax.random.normal(k4, (Cout,), dtype=jnp.float32)
    running_var = jnp.abs(1.0 + 0.1 * jax.random.normal(k5, (Cout,), dtype=jnp.float32))

    out = aspp_pooling(x, weight, gamma, beta, running_mean, running_var)
    out = jax.block_until_ready(out)

    ref = reference(x, weight, gamma, beta, running_mean, running_var)
    assert out.shape == (N, Cout, H, W), out.shape
    err = float(jnp.max(jnp.abs(out - ref)))
    assert jnp.allclose(out, ref, atol=1e-5, rtol=1e-5), err

    print("KERNEL_OK")
</pallas_src>

<mosaic_0001>
module attributes {stable_mosaic.version = 11 : i64} {
  func.func @_pool_conv_kernel(%arg0: i32, %arg1: i32, %arg2: memref<2x4x256xf32, #tpu.memory_space<vmem>>, %arg3: memref<4x8xf32, #tpu.memory_space<vmem>>, %arg4: memref<1x2x8xf32, #tpu.memory_space<vmem>>, %arg5: memref<2x4x128xf32, #tpu.memory_space<vmem>>) attributes {dimension_semantics = [#tpu.dimension_semantics<parallel>, #tpu.dimension_semantics<arbitrary>], iteration_bounds = array<i64: 1, 1>, scalar_prefetch = 0 : i64, scratch_operands = 1 : i64, tpu.core_type = #tpu.core_type<tc>, window_params = [{transform_indices = @transform_0, window_bounds = array<i64: 2, 4, 256>}, {transform_indices = @transform_1, window_bounds = array<i64: 4, 8>}, {transform_indices = @transform_2, window_bounds = array<i64: 1, 2, 8>}]} {
    %c0_i32 = arith.constant 0 : i32
    %0 = arith.cmpi eq, %arg1, %c0_i32 : i32
    %1 = arith.extui %0 : i1 to i32
    %c0_i32_0 = arith.constant 0 : i32
    %2 = arith.cmpi ne, %1, %c0_i32_0 : i32
    scf.if %2 {
      %cst_14 = arith.constant 0.000000e+00 : f32
      %16 = vector.broadcast %cst_14 : f32 to vector<2x4x128xf32>
      %c0_15 = arith.constant 0 : index
      %c0_16 = arith.constant 0 : index
      %c0_17 = arith.constant 0 : index
      %17 = vector.load %arg5[%c0_15, %c0_16, %c0_17] : memref<2x4x128xf32, #tpu.memory_space<vmem>>, vector<2x4x128xf32>
      tpu.vector_store %arg5[%c0_15, %c0_16, %c0_17], %16 {strides = array<i32>} : memref<2x4x128xf32, #tpu.memory_space<vmem>>, vector<2x4x128xf32>,
    } else {
    }
    %cst = arith.constant 0.000000e+00 : f32
    %3 = vector.broadcast %cst : f32 to vector<2x4x128xf32>
    %cst_1 = arith.constant 0.000000e+00 : f32
    %4 = vector.broadcast %cst_1 : f32 to vector<2x4x128xf32>
    %c0 = arith.constant 0 : index
    %c0_2 = arith.constant 0 : index
    %c0_3 = arith.constant 0 : index
    %5 = vector.load %arg2[%c0, %c0_2, %c0_3] : memref<2x4x256xf32, #tpu.memory_space<vmem>>, vector<2x4x128xf32>
    %6 = arith.addf %3, %5 : vector<2x4x128xf32>
    %c0_4 = arith.constant 0 : index
    %c0_5 = arith.constant 0 : index
    %c128 = arith.constant 128 : index
    %7 = vector.load %arg2[%c0_4, %c0_5, %c128] : memref<2x4x256xf32, #tpu.memory_space<vmem>>, vector<2x4x128xf32>
    %8 = arith.addf %4, %7 : vector<2x4x128xf32>
    %c0_6 = arith.constant 0 : index
    %c0_7 = arith.constant 0 : index
    %c0_8 = arith.constant 0 : index
    %9 = vector.load %arg5[%c0_6, %c0_7, %c0_8] : memref<2x4x128xf32, #tpu.memory_space<vmem>>, vector<2x4x128xf32>
    %10 = arith.addf %6, %8 : vector<2x4x128xf32>
    %11 = arith.addf %9, %10 : vector<2x4x128xf32>
    %c0_9 = arith.constant 0 : index
    %c0_10 = arith.constant 0 : index
    %c0_11 = arith.constant 0 : index
    %12 = vector.load %arg5[%c0_9, %c0_10, %c0_11] : memref<2x4x128xf32, #tpu.memory_space<vmem>>, vector<2x4x128xf32>
    tpu.vector_store %arg5[%c0_9, %c0_10, %c0_11], %11 {strides = array<i32>} : memref<2x4x128xf32, #tpu.memory_space<vmem>>, vector<2x4x128xf32>,
    %c0_i32_12 = arith.constant 0 : i32
    %13 = arith.cmpi eq, %arg1, %c0_i32_12 : i32
    %14 = arith.extui %13 : i1 to i32
    %c0_i32_13 = arith.constant 0 : i32
    %15 = arith.cmpi ne, %14, %c0_i32_13 : i32
    scf.if %15 {
      %c0_14 = arith.constant 0 : index
      %c0_15 = arith.constant 0 : index
      %c0_16 = arith.constant 0 : index
      %16 = vector.load %arg5[%c0_14, %c0_15, %c0_16] : memref<2x4x128xf32, #tpu.memory_space<vmem>>, vector<2x4x128xf32>
      %cst_17 = arith.constant dense<0.000000e+00> : vector<2x4xf32>
      %17 = vector.multi_reduction <add>, %16, %cst_17 [2] : vector<2x4x128xf32> to vector<2x4xf32>
      %c0_18 = arith.constant 0 : index
      %c0_19 = arith.constant 0 : index
      %18 = vector.load %arg3[%c0_18, %c0_19] : memref<4x8xf32, #tpu.memory_space<vmem>>, vector<4x8xf32>
      %cst_20 = arith.constant dense<0.000000e+00> : vector<2x8xf32>
      %19 = tpu.matmul %17, %18, %cst_20 {dimension_numbers = #tpu.dot_dimension_numbers<[1], [0], [0], [1], [0, 0, 1, 1], [], []>} : vector<2x4xf32>, vector<4x8xf32>, vector<2x8xf32> -> vector<2x8xf32>
      %c0_21 = arith.constant 0 : index
      %c0_22 = arith.constant 0 : index
      %c0_23 = arith.constant 0 : index
      %20 = vector.load %arg4[%c0_21, %c0_22, %c0_23] : memref<1x2x8xf32, #tpu.memory_space<vmem>>, vector<1x2x8xf32>
      %21 = vector.shape_cast %20 : vector<1x2x8xf32> to vector<2x8xf32>
      %22 = vector.shape_cast %19 : vector<2x8xf32> to vector<1x2x8xf32>
      tpu.vector_store %arg4[%c0_21, %c0_22, %c0_23], %22 {strides = array<i32>} : memref<1x2x8xf32, #tpu.memory_space<vmem>>, vector<1x2x8xf32>,
    } else {
    }
    return
  }
  func.func @transform_0(%arg0: i32, %arg1: i32) -> (i32, i32, i32) {
    %c0_i32 = arith.constant 0 : i32
    %c0_i32_0 = arith.constant 0 : i32
    return %c0_i32, %arg0, %arg1 : i32, i32, i32
  }
  func.func @transform_1(%arg0: i32, %arg1: i32) -> (i32, i32) {
    %c0_i32 = arith.constant 0 : i32
    %c0_i32_0 = arith.constant 0 : i32
    return %arg0, %c0_i32 : i32, i32
  }
  func.func @transform_2(%arg0: i32, %arg1: i32) -> (i32, i32, i32) {
    %c0_i32 = arith.constant 0 : i32
    %c0_i32_0 = arith.constant 0 : i32
    %c0_i32_1 = arith.constant 0 : i32
    return %arg0, %c0_i32, %c0_i32_0 : i32, i32, i32
  }
}

</mosaic_0001>

<bundles_post_ra>
// kernel: tpu_custom_call.1
= control target key start
LH: loop header
LB: loop body
LE: loop exit
PB: predicated region body
PF: predicated region fallthrough
CT: control target
= control target key end

     0   :  { %7 = vsyncpa [#allocation4], 0  ;;  %s247_s0 = inlined_call_operand.hbm [shape: f32[2,4,256], index: 0, kind: input, shape index: {}]   ;;  %s248_s1 = inlined_call_operand.hbm [shape: f32[4,8], index: 1, kind: input, shape index: {}]   ;;  %s249_s2 = inlined_call_operand.hbm [shape: f32[1,2,8], index: 2, kind: output, shape index: {}]  }
   0x1   :  { %8 = vsyncpa [#allocation7], 0 }
   0x2   :  { %9 = vsyncpa [#allocation5], 0  ;;  %s14_s11 = sshll.u32 %s247_s0, 4  ;;  %s217_s12 = smov [#allocation3]   ;;  %s15_s11 = int_to_ptr.hbm [resolvable:$true] %s14_s11 }
   0x3   :  { %s16_s13 = sshll.u32 %s217_s12, 4  ;;  %s28_s16 = sshll.u32 %s248_s1, 4  ;;  %s17_s13 = int_to_ptr.vmem [resolvable:$true] %s16_s13  ;;  %s29_s16 = int_to_ptr.hbm [resolvable:$true] %s28_s16 }
   0x4   :  { %s218_s17 = smov 128   ;;  %s219_s18 = smov 8  }
   0x5   :  { %22 = dma.hbm_to_vmem [thread:$0]  %s15_s11, 256, %s17_s13, [#allocation4], %s218_s17, %s218_s17, %s219_s18  }
   0x6   :  { %s220_s19 = smov [#allocation6]  }
   0x7   :  { %s30_s20 = sshll.u32 %s220_s19, 4  ;;  %s31_s20 = int_to_ptr.vmem [resolvable:$true] %s30_s20 }
   0x8   :  { %33 = dma.hbm_to_vmem [thread:$0]  %s29_s16, 64, %s31_s20, [#allocation7]  }
   0x9   :  { %211 = dma.done.wait [#allocation4], 256  }
   0xa   :  { %212 = vsyncadd [#allocation4], 4294967040 }
   0xb   :  { %213 = dma.done.wait [#allocation7], 64  }
   0xc   :  { %214 = vsyncadd [#allocation7], 4294967232  ;;  %v221_v0 = vmov 0.0   ;;  %v48_v1 = vld [vmem:[#allocation3] sm:$0xf]  ;;  %vm69_vm0 = vcmask 1043456   ;;  %v79_v17 = vlaneseq }
   0xd   :  { %46 = vst [vmem:[#allocation2] sm:$0xf] %v221_v0  ;;  %v52_v2 = vld [vmem:[#allocation3 + $0x4] sm:$0xf]  ;;  %v49_v3 = vld [vmem:[#allocation3 + $0x8] sm:$0xf] }
   0xe   :  { %47 = vst [vmem:[#allocation2 + $0x4] sm:$0xf] %v221_v0  ;;  %v58_v5 = vadd.f32 %v52_v2, %v48_v1  ;;  %v53_v6 = vld [vmem:[#allocation3 + $0xc] sm:$0xf]  ;;  %v76_v15 = vld [vmem:[#allocation6] sm:$0xf] }
   0xf   :  { %v59_v8 = vadd.f32 %v53_v6, %v49_v3  ;;  %131 = vmatpush.msk.msra.mxu0 %vm69_vm0, %v76_v15  ;;  %v80_v18 = vand.u32 127, %v79_v17  ;;  %vm83_vm1 = vcmask 1041409   ;;  %vm85_vm2 = vcmask 31744   ;;  %s222_s0 = smov [#allocation8]   ;;  %s120_s23 = sshll.u32 %s249_s2, 4  ;;  %s121_s23 = int_to_ptr.hbm [resolvable:$true] %s120_s23 }
  0x10   :  { %s118_s1 = sshll.u32 %s222_s0, 4  ;;  %vm111_vm3 = vcmask 58368   ;;  %s119_s1 = int_to_ptr.vmem [resolvable:$true] %s118_s1 }
  0x14   :  { %v56_v4 = vld [vmem:[#allocation2] sm:$0xf] }
  0x15   :  { %v57_v7 = vld [vmem:[#allocation2 + $0x4] sm:$0xf]  ;;  %v60_v9 = vadd.f32 %v58_v5, %v56_v4 }
  0x16   :  { %v61_v10 = vadd.f32 %v59_v8, %v57_v7 }
  0x17   :  { %62 = vst [vmem:[#allocation2] sm:$0xf] %v60_v9 }
  0x18   :  { %63 = vst [vmem:[#allocation2 + $0x4] sm:$0xf] %v61_v10 }
  0x1e   :  { %v67_v11 = vld [vmem:[#allocation2] sm:$0xf] }
  0x1f   :  { %v70_v12 = vsel %vm69_vm0, %v67_v11, 0.0  ;;  %v68_v13 = vld [vmem:[#allocation2 + $0x4] sm:$0xf] }
  0x20   :  { %71 = vadd.xlane.f32.xlu0 %v70_v12  ;;  %v73_v14 = vsel %vm69_vm0, %v68_v13, 0.0 }
  0x28   :  { %74 = vadd.xlane.f32.xlu0 %v73_v14 }
  0x93   :  { %v72_v16 = vpop.xlane.xlu0 %71 }
  0x94   :  { %v81_v20 = vperm.slane %v72_v16, %v80_v18 }
  0x9b   :  { %v75_v19 = vpop.xlane.xlu0 %74 }
  0x9c   :  { %v82_v21 = vperm.slane %v75_v19, %v80_v18 }
  0x9e   :  { %v84_v22 = vsel %vm83_vm1, %v82_v21, %v81_v20 }
  0x9f   :  { %132 = vmatmul.msk.f32.vlgmr.msra.gmra.mxu0 %vm85_vm2, %v84_v22 }
 0x11c   :  { %v108_v23 = vpop.f32.mrf.mxu0 }
 0x11d   :  { %112 = vst.msk [vmem:[#allocation8] sm:$0x3] %vm111_vm3, %v108_v23 }
 0x11e   :  { %123 = dma.vmem_to_hbm [thread:$0]  %s119_s1, 32, %s121_s23, [#allocation5]  }
 0x11f   :  { %215 = dma.done.wait [#allocation5], 32  }
 0x120   :  { %216 = vsyncadd [#allocation5], 4294967264 }
 0x121   :  { %128 = vsyncpa [#allocation4], 1 }
 0x122   :  { %129 = vsyncpa [#allocation7], 1 }
 0x123   :  { %130 = vsyncpa [#allocation5], 1 }

</bundles_post_ra>
